<compile_context>
chip_gen: v5e
topology: v5e:2x2
jax: 0.10.0
libtpu: 0.0.40
codegen_flags: <defaults>
</compile_context>

<pallas_src>
import jax
import jax.numpy as jnp
from jax.experimental import pallas as pl
from jax.experimental.pallas import tpu as pltpu


def _round_up(x, m):
    return ((x + m - 1) // m) * m


def _fused_embedders_kernel(scale_ref, x_ref, w1_ref, b1_ref, w2_ref, b2_ref, out_ref):
    """One (branch, batch_tile) grid step: fused Linear->ReLU->Linear, scaled store."""
    b = pl.program_id(0)
    # In-kernel bf16 cast of the streamed x tile (hides under DMA / MXU).
    x = x_ref[...].astype(jnp.bfloat16)
    h = jnp.dot(x, w1_ref[...], preferred_element_type=jnp.float32)
    h = jnp.maximum(h + b1_ref[...], 0.0)            # bias add + ReLU in f32
    # TODO(synk): training-time stochastic dropout intentionally omitted (eval mode).
    o = jnp.dot(h.astype(jnp.bfloat16), w2_ref[...],
                preferred_element_type=jnp.float32)
    o = o + b2_ref[...]
    # Per-branch scalar weight (softmax'd in the wrapper; 1.0 for single-branch).
    out_ref[...] = (o * scale_ref[b]).astype(out_ref.dtype)


def stack_branch_params(branch_params):
    """Stack per-branch (w1, b1, w2, b2) and cast weights to bf16 ONCE.

    w1: (F, H), b1: (H,), w2: (H, E), b2: (E,)  ->
    (nb, F, H) bf16, (nb, 1, H) f32, (nb, H, E) bf16, (nb, 1, E) f32
    """
    w1s = jnp.stack([p[0] for p in branch_params]).astype(jnp.bfloat16)
    b1s = jnp.stack([p[1].reshape(1, -1) for p in branch_params]).astype(jnp.float32)
    w2s = jnp.stack([p[2] for p in branch_params]).astype(jnp.bfloat16)
    b2s = jnp.stack([p[3].reshape(1, -1) for p in branch_params]).astype(jnp.float32)
    return w1s, b1s, w2s, b2s


def _pick_batch_tile(B, block_b):
    tb = min(_round_up(block_b, 16), _round_up(B, 16))
    # Keep >=2 batch tiles when the batch allows it, so v7x's 2 TensorCores both
    # get work on the (parallel) batch axis even with a single branch.
    if B >= 32 and tb >= _round_up(B, 16):
        tb = _round_up(-(-B // 2), 16)
    return tb


def fused_linear_embedders(x, w1s, b1s, w2s, b2s, scales, *,
                           block_b=512, out_dtype=jnp.float32):
    """All LinearEmbedder branches + scale + concat in one pallas_call.

    x      : (B, 1, F) float32
    w1s    : (nb, F, H) bf16,  b1s: (nb, 1, H) f32
    w2s    : (nb, H, E) bf16,  b2s: (nb, 1, E) f32
    scales : (nb,) f32 per-branch output scales
    returns (B, nb*E) out_dtype
    """
    if x.ndim != 3 or x.shape[1] != 1:
        raise ValueError(f"Expected input shape (batch, 1, size), but got {x.shape}")
    xs = jnp.squeeze(x, axis=1)                       # (B, F), stays f32 in HBM
    B, F = xs.shape
    nb, _, H = w1s.shape
    E = w2s.shape[2]

    tb = _pick_batch_tile(B, block_b)
    Bp = _round_up(B, tb)
    if Bp != B:                                       # only when B % tb != 0
        xs = jnp.pad(xs, ((0, Bp - B), (0, 0)))
    n_bt = Bp // tb

    # Preferred layout: write each branch straight into the concatenated output
    # (lane-dense as long as E is a multiple of 128).
    concat_layout = (nb == 1) or (E % 128 == 0)

    in_specs = [
        pl.BlockSpec((tb, F), lambda b, i, s: (i, 0)),          # x streamed per tile
        pl.BlockSpec((None, F, H), lambda b, i, s: (b, 0, 0)),  # per-branch weights:
        pl.BlockSpec((None, 1, H), lambda b, i, s: (b, 0, 0)),  # block index constant
        pl.BlockSpec((None, H, E), lambda b, i, s: (b, 0, 0)),  # across batch tiles ->
        pl.BlockSpec((None, 1, E), lambda b, i, s: (b, 0, 0)),  # VMEM-resident
    ]
    if concat_layout:
        out_shape = jax.ShapeDtypeStruct((Bp, nb * E), out_dtype)
        out_specs = pl.BlockSpec((tb, E), lambda b, i, s: (i, b))
    else:
        out_shape = jax.ShapeDtypeStruct((nb, Bp, E), out_dtype)
        out_specs = pl.BlockSpec((None, tb, E), lambda b, i, s: (b, i, 0))

    # VMEM budget: double-buffered blocks + f32/bf16 intermediates, 4 MiB headroom,
    # capped well below v7x's 64 MiB physical VMEM.
    out_itemsize = jnp.dtype(out_dtype).itemsize
    block_bytes = (
        2 * tb * F * 4                 # x tiles (f32), double-buffered
        + 2 * (F * H + H * E) * 2      # bf16 weights, double-buffered
        + 2 * (H + E) * 4              # f32 biases, double-buffered
        + 2 * tb * E * out_itemsize    # output tiles, double-buffered
        + tb * (H + E) * 4             # f32 intermediates (h, o)
        + tb * (F + H) * 2             # in-kernel bf16 casts
    )
    vmem_limit = int(min(max(block_bytes + (4 << 20), 16 << 20), 48 << 20))

    out = pl.pallas_call(
        _fused_embedders_kernel,
        out_shape=out_shape,
        grid_spec=pltpu.PrefetchScalarGridSpec(
            num_scalar_prefetch=1,                     # scales -> SMEM
            grid=(nb, n_bt),                           # branch outer, batch inner
            in_specs=in_specs,
            out_specs=out_specs,
        ),
        compiler_params=pltpu.CompilerParams(
            dimension_semantics=("parallel", "parallel"),
            vmem_limit_bytes=vmem_limit,
        ),
    )(scales, xs, w1s, b1s, w2s, b2s)

    if concat_layout:
        return out[:B] if Bp != B else out
    # Fallback layout (E not a multiple of 128, nb > 1): one extra transpose pass.
    out = jnp.transpose(out, (1, 0, 2)).reshape(Bp, nb * E)
    return out[:B] if Bp != B else out


def multiconcat_backbone_forward(x, stacked_params, emb_weights=None, *,
                                 normalize_emb_weights=True,
                                 normalize_emb_temp=1.0,
                                 block_b=512, out_dtype=jnp.float32):
    """MultiConcatBackbone.forward for LinearEmbedder branches.

    stacked_params: output of stack_branch_params([...]); do the stacking/cast once.
    emb_weights:    list of shape-(1,) raw branch weights (ignored for one branch).
    """
    w1s, b1s, w2s, b2s = stacked_params
    nb = w1s.shape[0]
    if nb == 1:
        # Single embedding: backbone returns the embedder output directly (no scale).
        scales = jnp.ones((1,), jnp.float32)
    else:
        raw = jnp.stack([jnp.reshape(w, ()) for w in emb_weights]).astype(jnp.float32)
        scales = (jax.nn.softmax(raw / normalize_emb_temp)
                  if normalize_emb_weights else raw)
    return fused_linear_embedders(x, w1s, b1s, w2s, b2s, scales,
                                  block_b=block_b, out_dtype=out_dtype)


def init_params(key, in_features, hidden_dim, embedding_dim, dtype=jnp.float32):
    """Deterministic init mimicking torch.nn.Linear default (uniform +-1/sqrt(fan_in))."""
    k1, k2, k3, k4 = jax.random.split(key, 4)
    lim1 = 1.0 / jnp.sqrt(jnp.asarray(in_features, dtype))
    lim2 = 1.0 / jnp.sqrt(jnp.asarray(hidden_dim, dtype))
    w1 = jax.random.uniform(k1, (in_features, hidden_dim), dtype, -lim1, lim1)
    b1 = jax.random.uniform(k2, (hidden_dim,), dtype, -lim1, lim1)
    w2 = jax.random.uniform(k3, (hidden_dim, embedding_dim), dtype, -lim2, lim2)
    b2 = jax.random.uniform(k4, (embedding_dim,), dtype, -lim2, lim2)
    return w1, b1, w2, b2


if __name__ == "__main__":
    # Small shapes consistent with the module (vector input (batch, 1, F));
    # batch chosen so the batch axis tiles into >1 grid step.
    batch = 256
    in_features = 64
    hidden_dim = 128
    embedding_dim = 256

    key = jax.random.PRNGKey(0)
    kx, kp1, kp2, kw1, kw2 = jax.random.split(key, 5)
    x = jax.random.normal(kx, (batch, 1, in_features), dtype=jnp.float32)

    p1 = init_params(kp1, in_features, hidden_dim, embedding_dim)
    p2 = init_params(kp2, in_features, hidden_dim, embedding_dim)
    ew1 = jax.random.normal(kw1, (1,)) * 0.1 + 1.0   # per-branch scalar weights
    ew2 = jax.random.normal(kw2, (1,)) * 0.1 + 1.0

    # Stack + bf16-cast the params ONCE (outside the per-call path).
    sp1 = stack_branch_params([p1])
    sp12 = stack_branch_params([p1, p2])

    # Single-embedding path (backbone returns embedder output directly).
    out1 = jax.block_until_ready(multiconcat_backbone_forward(x, sp1))

    # Multi-embedding path: softmax-weighted concat of two LinearEmbedder branches,
    # fused into a single pallas_call (grid = (branch, batch_tile)).
    out2 = jax.block_until_ready(
        multiconcat_backbone_forward(x, sp12, emb_weights=[ew1, ew2]))

    # Plain-JAX reference with the same bf16-operand / f32-accumulate math.
    def ref_embed(params):
        w1, b1, w2, b2 = params
        xs = jnp.squeeze(x, axis=1).astype(jnp.bfloat16)
        h = jnp.dot(xs, w1.astype(jnp.bfloat16), preferred_element_type=jnp.float32)
        h = jnp.maximum(h + b1, 0.0)
        o = jnp.dot(h.astype(jnp.bfloat16), w2.astype(jnp.bfloat16),
                    preferred_element_type=jnp.float32)
        return o + b2

    r1 = ref_embed(p1)
    ww = jax.nn.softmax(jnp.stack([ew1.reshape(()), ew2.reshape(())]))
    r2 = jnp.concatenate([ww[0] * r1, ww[1] * ref_embed(p2)], axis=1)

    assert out1.shape == (batch, embedding_dim)
    assert out2.shape == (batch, 2 * embedding_dim)
    assert jnp.allclose(out1, r1, atol=2e-2, rtol=2e-2)
    assert jnp.allclose(out2, r2, atol=2e-2, rtol=2e-2)

    print("KERNEL_OK")
</pallas_src>

<mosaic_0001>
module attributes {stable_mosaic.version = 11 : i64} {
  func.func @_fused_embedders_kernel(%arg0: i32, %arg1: i32, %arg2: memref<1xf32, #tpu.memory_space<smem>>, %arg3: memref<128x64xf32, #tpu.memory_space<vmem>>, %arg4: memref<1x64x128xbf16, #tpu.memory_space<vmem>>, %arg5: memref<1x1x128xf32, #tpu.memory_space<vmem>>, %arg6: memref<1x128x256xbf16, #tpu.memory_space<vmem>>, %arg7: memref<1x1x256xf32, #tpu.memory_space<vmem>>, %arg8: memref<128x256xf32, #tpu.memory_space<vmem>>) attributes {dimension_semantics = [#tpu.dimension_semantics<parallel>, #tpu.dimension_semantics<parallel>], iteration_bounds = array<i64: 1, 2>, scalar_prefetch = 1 : i64, scratch_operands = 0 : i64, tpu.core_type = #tpu.core_type<tc>, window_params = [{transform_indices = @transform_0, window_bounds = array<i64: 128, 64>}, {transform_indices = @transform_1, window_bounds = array<i64: 1, 64, 128>}, {transform_indices = @transform_2, window_bounds = array<i64: 1, 1, 128>}, {transform_indices = @transform_3, window_bounds = array<i64: 1, 128, 256>}, {transform_indices = @transform_4, window_bounds = array<i64: 1, 1, 256>}, {transform_indices = @transform_5, window_bounds = array<i64: 128, 256>}]} {
    %c0 = arith.constant 0 : index
    %c0_0 = arith.constant 0 : index
    %0 = vector.load %arg3[%c0, %c0_0] : memref<128x64xf32, #tpu.memory_space<vmem>>, vector<128x64xf32>
    %1 = arith.truncf %0 : vector<128x64xf32> to vector<128x64xbf16>
    %c0_1 = arith.constant 0 : index
    %c0_2 = arith.constant 0 : index
    %c0_3 = arith.constant 0 : index
    %2 = vector.load %arg4[%c0_1, %c0_2, %c0_3] : memref<1x64x128xbf16, #tpu.memory_space<vmem>>, vector<1x64x128xbf16>
    %3 = vector.shape_cast %2 : vector<1x64x128xbf16> to vector<64x128xbf16>
    %cst = arith.constant dense<0.000000e+00> : vector<128x128xf32>
    %4 = tpu.matmul %1, %3, %cst {dimension_numbers = #tpu.dot_dimension_numbers<[1], [0], [0], [1], [0, 0, 1, 1], [], []>} : vector<128x64xbf16>, vector<64x128xbf16>, vector<128x128xf32> -> vector<128x128xf32>
    %c0_4 = arith.constant 0 : index
    %c0_5 = arith.constant 0 : index
    %c0_6 = arith.constant 0 : index
    %5 = vector.load %arg5[%c0_4, %c0_5, %c0_6] : memref<1x1x128xf32, #tpu.memory_space<vmem>>, vector<1x1x128xf32>
    %6 = vector.shape_cast %5 : vector<1x1x128xf32> to vector<1x128xf32>
    %7 = vector.broadcast %6 : vector<1x128xf32> to vector<128x128xf32>
    %8 = arith.addf %4, %7 : vector<128x128xf32>
    %cst_7 = arith.constant 0.000000e+00 : f32
    %9 = vector.broadcast %cst_7 : f32 to vector<128x128xf32>
    %10 = arith.maximumf %8, %9 : vector<128x128xf32>
    %11 = arith.truncf %10 : vector<128x128xf32> to vector<128x128xbf16>
    %c0_8 = arith.constant 0 : index
    %c0_9 = arith.constant 0 : index
    %c0_10 = arith.constant 0 : index
    %12 = vector.load %arg6[%c0_8, %c0_9, %c0_10] : memref<1x128x256xbf16, #tpu.memory_space<vmem>>, vector<1x128x256xbf16>
    %13 = vector.shape_cast %12 : vector<1x128x256xbf16> to vector<128x256xbf16>
    %cst_11 = arith.constant dense<0.000000e+00> : vector<128x256xf32>
    %14 = tpu.matmul %11, %13, %cst_11 {dimension_numbers = #tpu.dot_dimension_numbers<[1], [0], [0], [1], [0, 0, 1, 1], [], []>} : vector<128x128xbf16>, vector<128x256xbf16>, vector<128x256xf32> -> vector<128x256xf32>
    %c0_12 = arith.constant 0 : index
    %c0_13 = arith.constant 0 : index
    %c0_14 = arith.constant 0 : index
    %15 = vector.load %arg7[%c0_12, %c0_13, %c0_14] : memref<1x1x256xf32, #tpu.memory_space<vmem>>, vector<1x1x256xf32>
    %16 = vector.shape_cast %15 : vector<1x1x256xf32> to vector<1x256xf32>
    %17 = vector.broadcast %16 : vector<1x256xf32> to vector<128x256xf32>
    %18 = arith.addf %14, %17 : vector<128x256xf32>
    %19 = arith.index_cast %arg0 : i32 to index
    %20 = memref.load %arg2[%19] : memref<1xf32, #tpu.memory_space<smem>>
    %21 = vector.broadcast %20 : f32 to vector<128x256xf32>
    %22 = arith.mulf %18, %21 : vector<128x256xf32>
    %c0_15 = arith.constant 0 : index
    %c0_16 = arith.constant 0 : index
    %23 = vector.load %arg8[%c0_15, %c0_16] : memref<128x256xf32, #tpu.memory_space<vmem>>, vector<128x256xf32>
    tpu.vector_store %arg8[%c0_15, %c0_16], %22 {strides = array<i32>} : memref<128x256xf32, #tpu.memory_space<vmem>>, vector<128x256xf32>,
    return
  }
  func.func @transform_0(%arg0: i32, %arg1: i32, %arg2: memref<1xf32, #tpu.memory_space<smem>>) -> (i32, i32) {
    %c0_i32 = arith.constant 0 : i32
    %c0_i32_0 = arith.constant 0 : i32
    return %arg1, %c0_i32 : i32, i32
  }
  func.func @transform_1(%arg0: i32, %arg1: i32, %arg2: memref<1xf32, #tpu.memory_space<smem>>) -> (i32, i32, i32) {
    %c0_i32 = arith.constant 0 : i32
    %c0_i32_0 = arith.constant 0 : i32
    %c0_i32_1 = arith.constant 0 : i32
    return %arg0, %c0_i32, %c0_i32_0 : i32, i32, i32
  }
  func.func @transform_2(%arg0: i32, %arg1: i32, %arg2: memref<1xf32, #tpu.memory_space<smem>>) -> (i32, i32, i32) {
    %c0_i32 = arith.constant 0 : i32
    %c0_i32_0 = arith.constant 0 : i32
    %c0_i32_1 = arith.constant 0 : i32
    return %arg0, %c0_i32, %c0_i32_0 : i32, i32, i32
  }
  func.func @transform_3(%arg0: i32, %arg1: i32, %arg2: memref<1xf32, #tpu.memory_space<smem>>) -> (i32, i32, i32) {
    %c0_i32 = arith.constant 0 : i32
    %c0_i32_0 = arith.constant 0 : i32
    %c0_i32_1 = arith.constant 0 : i32
    return %arg0, %c0_i32, %c0_i32_0 : i32, i32, i32
  }
  func.func @transform_4(%arg0: i32, %arg1: i32, %arg2: memref<1xf32, #tpu.memory_space<smem>>) -> (i32, i32, i32) {
    %c0_i32 = arith.constant 0 : i32
    %c0_i32_0 = arith.constant 0 : i32
    %c0_i32_1 = arith.constant 0 : i32
    return %arg0, %c0_i32, %c0_i32_0 : i32, i32, i32
  }
  func.func @transform_5(%arg0: i32, %arg1: i32, %arg2: memref<1xf32, #tpu.memory_space<smem>>) -> (i32, i32) {
    %c0_i32 = arith.constant 0 : i32
    return %arg1, %arg0 : i32, i32
  }
}

</mosaic_0001>

<bundles_post_ra>
// kernel: tpu_custom_call.1
= control target key start
LH: loop header
LB: loop body
LE: loop exit
PB: predicated region body
PF: predicated region fallthrough
CT: control target
= control target key end

     0   :  { %s1581_s0 = inlined_call_operand.<no memory space> [shape: f32[1], index: 0, kind: input, shape index: {}]   ;;  %s1582_s1 = inlined_call_operand.vmem [shape: f32[256,64], index: 1, kind: input, shape index: {}]   ;;  %s1583_s2 = inlined_call_operand.vmem [shape: bf16[1,64,128], index: 2, kind: input, shape index: {}]   ;;  %s1584_s3 = inlined_call_operand.vmem [shape: f32[1,1,128], index: 3, kind: input, shape index: {}]   ;;  %s1585_s4 = inlined_call_operand.vmem [shape: bf16[1,128,256], index: 4, kind: input, shape index: {}]   ;;  %s1586_s5 = inlined_call_operand.vmem [shape: f32[1,1,256], index: 5, kind: input, shape index: {}]   ;;  %s1587_s6 = inlined_call_operand.hbm [shape: f32[256,256], index: 6, kind: output, shape index: {}]  }
   0x1   :  { %11 = sst [smem:[#allocation3]] %s1581_s0 }
   0x2   :  { %12 = vsyncpa [#allocation5], 0 }
   0x3   :  { %14 = vsyncpa [#allocation5 + $0x1], 0  ;;  %s1210_s23 = smov 0   ;;  %s1212_s24 = smov 0  }
   0x4   :  { %s1214_s25 = smov 0   ;;  %s1216_s26 = smov 0  }
   0x5   :  { %s1218_s27 = smov 0   ;;  %s1220_s28 = smov 0  }
   0x6 LB: > { %s888_s0 = sadd.s32 4294967295, %s1168_s28   ;;  %s889_s29 = sadd.s32 4294967294, %s1168_s28   ;;  %s1168_s28 = sphi %s1220_s28, %s20_s28   ;;  %s1164_s27 = sphi %s1218_s27, %s1594_s27   ;;  %s1160_s26 = sphi %s1216_s26, %s1593_s26   ;;  %s1156_s25 = sphi %s1214_s25, %s1592_s25   ;;  %s1152_s24 = sphi %s1212_s24, %s1591_s24   ;;  %s1148_s23 = sphi %s1210_s23, %s1590_s23  }
   0x7   : > { %s29_s30 = sadd.s32 1, %s1164_s27  ;;  %s171_s7 = sadd.s32 1, %s1156_s25 }
   0x8   : > { %p30_p0 = scmp.ge.s32.totalorder %s29_s30, 2  ;;  %p181_p1 = scmp.ne.s32.totalorder %s1156_s25, %s1152_s24 }
   0x9   : > { %p182_p2 = scmp.eq.s32.totalorder %s888_s0, 1  ;;  %p187_p3 = scmp.ne.s32.totalorder %s1152_s24, %s1148_s23 }
   0xa   : > { %s1596_s30 = smov (%p30_p0, %s29_s30), 0  ;;  %p188_p5 = scmp.eq.s32.totalorder %s889_s29, 1 }
   0xb   : > { %p1250_p4 = por %p182_p2, %p181_p1  ;;  %s166_s9 = ssub.s32 %s1164_s27, %s1596_s30 }
   0xc   : > { %p896_p6 = scmp.ge.s32.totalorder %s1168_s28, 1  ;;  %p169_p7 = scmp.eq.s32.totalorder %s166_s9, 0 }
   0xd   : > { %p1257_p8 = por %p188_p5, %p187_p3  ;;  %p244_p9 = scmp.lt.s32.totalorder %s1168_s28, 3 }
   0xe   : > { %s1263_s11 = scalar_select %p169_p7, %s1156_s25, %s171_s7  }
   0xf   : > { %p245_p10 = pnand %p896_p6, %p244_p9 }
  0x10   : > { %s898_s14 = sshll.u32 (!%p245_p10), %s1160_s26, 4  ;;  %s286_s0 = sand.u32 (!%p245_p10), 1, %s1152_s24  }
  0x11   : > { %248 = sbr.rel (%p245_p10) target bundleno = 470 (0x1d6), region = 40  ;;  %p290_p11 = scmp.lt.s32.totalorder (!%p245_p10), %s898_s14, 31 }
  0x12   : > { %s897_s29 = sshll.u32 (!%p245_p10), %s286_s0, 8  ;;  %s1015_s9 = sshll.u32 (!%p245_p10), %s1160_s26, 8 }
  0x13   : > { %s1446_s7 = scalar_lea.vmem (!%p245_p10), [#allocation4], %s897_s29  ;;  %s740_s26 = scalar_lea.sflag (!%p245_p10), [#allocation5], %s286_s0 }
  0x14   : > { %s755_s15 = sshll.u32 (!%p245_p10), %s1446_s7, 4  ;;  %s1110_s20 = scalar_lea.hbm (!%p245_p10), %s1587_s6, 512  ;;  %s756_s15 = int_to_ptr.vmem [resolvable:$true] %s755_s15 }
  0x16   : > { %v997_v0 = vld [vmem:[%s1583_s2 + $0x18] sm:$0xff]  ;;  %v996_v1 = vld [vmem:[%s1583_s2 + $0x10] sm:$0xff]  ;;  %s1598_s14 = smov (!%p290_p11, %s898_s14), 31  ;;  %v995_v2 = vld [vmem:[%s1583_s2 + $0x8] sm:$0xff]  ;;  %vm375_vm0 = vcmask 523264  }
  0x17   : > { %404 = vmatpush.bf16.msra.mxu0 %v997_v0  ;;  %s899_s17 = sshll.u32 %s1598_s14, 3  ;;  %v994_v3 = vld [vmem:[%s1583_s2] sm:$0xff]  ;;  %v982_v19 = vld [vmem:[%s1585_s4 + $0x70] sm:$0xf]  ;;  %v1013_v20 = vld [vmem:[%s1585_s4 + $0x74] sm:$0xf0]  ;;  %s754_s14 = scalar_lea.hbm %s1587_s6, %s1015_s9 }
  0x18   : > { %s1278_s22 = scalar_lea.vmem %s1582_s1, %s899_s17  ;;  %v1012_v21 = vld [vmem:[%s1585_s4 + $0x74] sm:$0xf]  ;;  %v983_v22 = vor.u32 %v1013_v20, %v982_v19  ;;  %v984_v23 = vld [vmem:[%s1585_s4 + $0x78] sm:$0xf0]  ;;  %v974_v28 = vld [vmem:[%s1585_s4 + $0x60] sm:$0xf] }
  0x19   : > { %v315_v4 = vld [vmem:[%s1278_s22] sm:$0xff]  ;;  %v316_v5 = vld [vmem:[%s1278_s22 + $0x8] sm:$0xff]  ;;  %v317_v7 = vld [vmem:[%s1278_s22 + $0x10] sm:$0xff]  ;;  %v1310_v24 = vor.u32 %v1012_v21, %v984_v23  ;;  %s757_s16 = sshll.u32 %s754_s14, 4  ;;  %s758_s16 = int_to_ptr.hbm [resolvable:$true] %s757_s16 }
  0x1a   : > { %v331_v6 = vpack.c.bf16 %v316_v5, %v315_v4  ;;  %v318_v8 = vld [vmem:[%s1278_s22 + $0x18] sm:$0xff]  ;;  %v319_v10 = vld [vmem:[%s1278_s22 + $0x20] sm:$0xff]  ;;  %v320_v11 = vld [vmem:[%s1278_s22 + $0x28] sm:$0xff]  ;;  %575 = vmatpush.bf16.msra.mxu1 %v983_v22  ;;  %1016 = vmatpush.bf16.msra.mxu3 %v983_v22  ;;  %s1104_s17 = sshra.s32 %s758_s16, 4  ;;  %s1105_s17 = int_to_ptr.hbm [resolvable:$true] %s1104_s17 }
  0x1b   : > { %405 = vmatpush.bf16.msra.mxu0 %v996_v1  ;;  %v332_v9 = vpack.c.bf16 %v318_v8, %v317_v7  ;;  %v333_v12 = vpack.c.bf16 %v320_v11, %v319_v10  ;;  %v321_v13 = vld [vmem:[%s1278_s22 + $0x30] sm:$0xff]  ;;  %v322_v14 = vld [vmem:[%s1278_s22 + $0x38] sm:$0xff]  ;;  %v323_v16 = vld [vmem:[%s1278_s22 + $0x40] sm:$0xff]  ;;  %624 = vmatpush.bf16.msra.mxu2 %v1310_v24  ;;  %s1106_s18 = scalar_lea.hbm %s1105_s17, 256  ;;  %p1111_p1 = scmp.lt.s32.totalorder %s1105_s17, %s1587_s6 }
  0x1c   : > { %v334_v15 = vpack.c.bf16 %v322_v14, %v321_v13  ;;  %v324_v17 = vld [vmem:[%s1278_s22 + $0x48] sm:$0xff]  ;;  %v325_v25 = vld [vmem:[%s1278_s22 + $0x50] sm:$0xff]  ;;  %v326_v26 = vld [vmem:[%s1278_s22 + $0x58] sm:$0xff]  ;;  %p1107_p12 = scmp.ne.s32.totalorder %s1105_s17, %s1106_s18  ;;  %p1112_p2 = scmp.lt.s32.totalorder %s1110_s20, %s1106_s18 }
  0x1d   : > { %v335_v18 = vpack.c.bf16 %v324_v17, %v323_v16  ;;  %v336_v27 = vpack.c.bf16 %v326_v26, %v325_v25  ;;  %v1011_v29 = vld [vmem:[%s1585_s4 + $0x64] sm:$0xf0]  ;;  %v1010_v30 = vld [vmem:[%s1585_s4 + $0x64] sm:$0xf]  ;;  %v976_v32 = vld [vmem:[%s1585_s4 + $0x68] sm:$0xf0] }
  0x1e   : > { %v975_v31 = vor.u32 %v1011_v29, %v974_v28  ;;  %v1328_v33 = vor.u32 %v1010_v30, %v976_v32  ;;  %v966_v34 = vld [vmem:[%s1585_s4 + $0x50] sm:$0xf]  ;;  %v1009_v35 = vld [vmem:[%s1585_s4 + $0x54] sm:$0xf0]  ;;  %v1008_v36 = vld [vmem:[%s1585_s4 + $0x54] sm:$0xf]  ;;  %p1108_p13 = pnand %p1107_p12, %p1250_p4  ;;  %p1113_p3 = por %p1112_p2, %p1111_p1 }
  0x1f   : > { %406 = vmatpush.bf16.msra.mxu0 %v995_v2  ;;  %v967_v37 = vor.u32 %v1009_v35, %v966_v34  ;;  %v968_v38 = vld [vmem:[%s1585_s4 + $0x58] sm:$0xf0]  ;;  %v958_v40 = vld [vmem:[%s1585_s4 + $0x40] sm:$0xf]  ;;  %v1007_v41 = vld [vmem:[%s1585_s4 + $0x44] sm:$0xf0] }
  0x20   : > { %576 = vmatpush.bf16.msra.mxu1 %v975_v31  ;;  %1017 = vmatpush.bf16.msra.mxu3 %v975_v31  ;;  %v971_v39 = vor.u32 %v1008_v36, %v968_v38  ;;  %v1006_v42 = vld [vmem:[%s1585_s4 + $0x44] sm:$0xf]  ;;  %v960_v43 = vld [vmem:[%s1585_s4 + $0x48] sm:$0xf0]  ;;  %v959_v44 = vor.u32 %v1007_v41, %v958_v40  ;;  %v950_v48 = vld [vmem:[%s1585_s4 + $0x30] sm:$0xf]  ;;  %p1109_p0 = pneg %p1108_p13 }
  0x21   : > { %625 = vmatpush.bf16.msra.mxu2 %v1328_v33  ;;  %v963_v45 = vor.u32 %v1006_v42, %v960_v43  ;;  %v327_v46 = vld [vmem:[%s1278_s22 + $0x60] sm:$0xff]  ;;  %v328_v47 = vld [vmem:[%s1278_s22 + $0x68] sm:$0xff]  ;;  %v1005_v49 = vld [vmem:[%s1585_s4 + $0x34] sm:$0xf0] }
  0x22   : > { %v1004_v50 = vld [vmem:[%s1585_s4 + $0x34] sm:$0xf]  ;;  %v951_v51 = vor.u32 %v1005_v49, %v950_v48  ;;  %v952_v52 = vld [vmem:[%s1585_s4 + $0x38] sm:$0xf0]  ;;  %v337_v53 = vpack.c.bf16 %v328_v47, %v327_v46  ;;  %v942_v55 = vld [vmem:[%s1585_s4 + $0x20] sm:$0xf]  ;;  %p1114_p5 = pnand %p1113_p3, %p1109_p0 }
  0x23   : > { %407 = vmatpush.bf16.msra.mxu0 %v994_v3  ;;  %v955_v54 = vor.u32 %v1004_v50, %v952_v52  ;;  %v1003_v56 = vld [vmem:[%s1585_s4 + $0x24] sm:$0xf0]  ;;  %v1002_v57 = vld [vmem:[%s1585_s4 + $0x24] sm:$0xf]  ;;  %v944_v59 = vld [vmem:[%s1585_s4 + $0x28] sm:$0xf0] }
  0x24   : > { %577 = vmatpush.bf16.msra.mxu1 %v967_v37  ;;  %1018 = vmatpush.bf16.msra.mxu3 %v967_v37  ;;  %v943_v58 = vor.u32 %v1003_v56, %v942_v55  ;;  %v947_v60 = vor.u32 %v1002_v57, %v944_v59  ;;  %v934_v61 = vld [vmem:[%s1585_s4 + $0x10] sm:$0xf]  ;;  %v1001_v62 = vld [vmem:[%s1585_s4 + $0x14] sm:$0xf0]  ;;  %v1000_v63 = vld [vmem:[%s1585_s4 + $0x14] sm:$0xf] }
  0x25   : > { %626 = vmatpush.bf16.msra.mxu2 %v971_v39  ;;  %v935_v0 = vor.u32 %v1001_v62, %v934_v61  ;;  %v936_v1 = vld [vmem:[%s1585_s4 + $0x18] sm:$0xf0]  ;;  %v926_v3 = vld [vmem:[%s1585_s4] sm:$0xf]  ;;  %v999_v4 = vld [vmem:[%s1585_s4 + $0x4] sm:$0xf0] }
  0x26   : > { %916 = vmatmul.msk.bf16.vlgmr.msra.gmra.mxu0 %vm375_vm0, %v331_v6  ;;  %v939_v2 = vor.u32 %v1000_v63, %v936_v1  ;;  %v998_v5 = vld [vmem:[%s1585_s4 + $0x4] sm:$0xf]  ;;  %v927_v6 = vor.u32 %v999_v4, %v926_v3  ;;  %v928_v7 = vld [vmem:[%s1585_s4 + $0x8] sm:$0xf0]  ;;  %v330_v10 = vld [vmem:[%s1278_s22 + $0x78] sm:$0xff] }
  0x27   : > { %v931_v8 = vor.u32 %v998_v5, %v928_v7  ;;  %v1414_v13 = vld [vmem:[%s1584_s3] ss:$0 sm:$0xff] }
  0x28   : > { %578 = vmatpush.bf16.msra.mxu1 %v959_v44  ;;  %1019 = vmatpush.bf16.msra.mxu3 %v959_v44  ;;  %v489_v5 = vld [vmem:[%s1586_s5] sm:$0x3] }
  0x29   : > { %627 = vmatpush.bf16.msra.mxu2 %v963_v45 }
  0x2c   : > { %579 = vmatpush.bf16.msra.mxu1 %v951_v51  ;;  %1020 = vmatpush.bf16.msra.mxu3 %v951_v51 }
  0x2d   : > { %628 = vmatpush.bf16.msra.mxu2 %v955_v54 }
  0x30   : > { %580 = vmatpush.bf16.msra.mxu1 %v943_v58  ;;  %1021 = vmatpush.bf16.msra.mxu3 %v943_v58 }
  0x31   : > { %629 = vmatpush.bf16.msra.mxu2 %v947_v60 }
  0x34   : > { %581 = vmatpush.bf16.msra.mxu1 %v935_v0  ;;  %1022 = vmatpush.bf16.msra.mxu3 %v935_v0 }
  0x35   : > { %630 = vmatpush.bf16.msra.mxu2 %v939_v2 }
  0x36   : > { %917 = vmatmul.msk.bf16.gmra.mxu0 %vm375_vm0, %v332_v9  ;;  %v329_v9 = vld [vmem:[%s1278_s22 + $0x70] sm:$0xff]  ;;  %s673_s22 = sld [smem:[#allocation3]] }
  0x37   : > { %v338_v11 = vpack.c.bf16 %v330_v10, %v329_v9 }
  0x38   : > { %582 = vmatpush.bf16.msra.mxu1 %v927_v6  ;;  %1023 = vmatpush.bf16.msra.mxu3 %v927_v6  ;;  %v1436_v6 = vperm.slane %v489_v5, 0 }
  0x39   : > { %631 = vmatpush.bf16.msra.mxu2 %v931_v8 }
  0x3c   : > { %1024 = vmatpush.bf16.msrb.mxu3 %v1310_v24 }
  0x40   : > { %1025 = vmatpush.bf16.msrb.mxu3 %v1328_v33 }
  0x44   : > { %1026 = vmatpush.bf16.msrb.mxu3 %v971_v39 }
  0x46   : > { %918 = vmatmul.msk.bf16.gmra.mxu0 %vm375_vm0, %v333_v12 }
  0x48   : > { %1027 = vmatpush.bf16.msrb.mxu3 %v963_v45 }
  0x4c   : > { %1028 = vmatpush.bf16.msrb.mxu3 %v955_v54 }
  0x50   : > { %1029 = vmatpush.bf16.msrb.mxu3 %v947_v60 }
  0x54   : > { %1030 = vmatpush.bf16.msrb.mxu3 %v939_v2 }
  0x56   : > { %919 = vmatmul.msk.bf16.gmra.mxu0 %vm375_vm0, %v334_v15 }
  0x58   : > { %1031 = vmatpush.bf16.msrb.mxu3 %v931_v8  ;;  %v1440_v8 = vstv %s673_s22 }
  0x66   : > { %920 = vmatmul.msk.bf16.gmra.mxu0 %vm375_vm0, %v335_v18 }
  0x76   : > { %921 = vmatmul.msk.bf16.gmra.mxu0 %vm375_vm0, %v336_v27 }
  0x86   : > { %922 = vmatmul.msk.bf16.gmra.mxu0 %vm375_vm0, %v337_v53 }
  0x96   : > { %923 = vmatmul.msk.bf16.gmra.mxu0 %vm375_vm0, %v338_v11  ;;  %v1444_v11 = vperm.slane %v489_v5, 1 }
  0xa3   : > { %v409_v12 = vpop.f32.mrf.mxu0 }
  0xa4   : > { %v410_v14 = vadd.f32 %v1414_v13, %v409_v12 }
  0xa6   : > { %v449_v17 = vmax.f32 %v410_v14, 0.0 }
  0xab   : > { %v411_v15 = vpop.f32.mrf.mxu0 }
  0xac   : > { %v412_v16 = vadd.f32 %v1414_v13, %v411_v15 }
  0xae   : > { %v450_v18 = vmax.f32 %v412_v16, 0.0 }
  0xb0   : > { %v465_v19 = vpack.c.bf16 %v450_v18, %v449_v17 }
  0xb2   : > { %583 = vmatmul.bf16.vlgmr.msra.gmra.mxu1 %v465_v19  ;;  %632 = vmatmul.bf16.vlgmr.msra.gmra.mxu2 %v465_v19 }
  0xb3   : > { %v414_v20 = vpop.f32.mrf.mxu0 }
  0xb4   : > { %v415_v21 = vadd.f32 %v1414_v13, %v414_v20 }
  0xb6   : > { %v451_v24 = vmax.f32 %v415_v21, 0.0 }
  0xbb   : > { %v416_v22 = vpop.f32.mrf.mxu0 }
  0xbc   : > { %v417_v23 = vadd.f32 %v1414_v13, %v416_v22 }
  0xbe   : > { %v452_v25 = vmax.f32 %v417_v23, 0.0 }
  0xc0   : > { %v466_v26 = vpack.c.bf16 %v452_v25, %v451_v24 }
  0xc2   : > { %588 = vmatmul.bf16.gmra.mxu1 %v466_v26  ;;  %637 = vmatmul.bf16.gmra.mxu2 %v466_v26 }
  0xc3   : > { %v419_v27 = vpop.f32.mrf.mxu0 }
  0xc4   : > { %v420_v28 = vadd.f32 %v1414_v13, %v419_v27 }
  0xc6   : > { %v453_v31 = vmax.f32 %v420_v28, 0.0 }
  0xcb   : > { %v421_v29 = vpop.f32.mrf.mxu0 }
  0xcc   : > { %v422_v30 = vadd.f32 %v1414_v13, %v421_v29 }
  0xce   : > { %v454_v32 = vmax.f32 %v422_v30, 0.0 }
  0xd0   : > { %v467_v33 = vpack.c.bf16 %v454_v32, %v453_v31 }
  0xd2   : > { %593 = vmatmul.bf16.gmra.mxu1 %v467_v33  ;;  %642 = vmatmul.bf16.gmra.mxu2 %v467_v33 }
  0xd3   : > { %v424_v34 = vpop.f32.mrf.mxu0 }
  0xd4   : > { %v425_v35 = vadd.f32 %v1414_v13, %v424_v34 }
  0xd6   : > { %v455_v38 = vmax.f32 %v425_v35, 0.0 }
  0xdb   : > { %v426_v36 = vpop.f32.mrf.mxu0 }
  0xdc   : > { %v427_v37 = vadd.f32 %v1414_v13, %v426_v36 }
  0xde   : > { %v456_v39 = vmax.f32 %v427_v37, 0.0 }
  0xe0   : > { %v468_v40 = vpack.c.bf16 %v456_v39, %v455_v38 }
  0xe2   : > { %598 = vmatmul.bf16.gmra.mxu1 %v468_v40  ;;  %647 = vmatmul.bf16.gmra.mxu2 %v468_v40 }
  0xe3   : > { %v429_v41 = vpop.f32.mrf.mxu0 }
  0xe4   : > { %v430_v42 = vadd.f32 %v1414_v13, %v429_v41 }
  0xe6   : > { %v457_v45 = vmax.f32 %v430_v42, 0.0 }
  0xeb   : > { %v431_v43 = vpop.f32.mrf.mxu0 }
  0xec   : > { %v432_v44 = vadd.f32 %v1414_v13, %v431_v43 }
  0xee   : > { %v458_v46 = vmax.f32 %v432_v44, 0.0 }
  0xf0   : > { %v469_v47 = vpack.c.bf16 %v458_v46, %v457_v45 }
  0xf2   : > { %603 = vmatmul.bf16.gmra.mxu1 %v469_v47  ;;  %652 = vmatmul.bf16.gmra.mxu2 %v469_v47 }
  0xf3   : > { %v434_v48 = vpop.f32.mrf.mxu0 }
  0xf4   : > { %v435_v49 = vadd.f32 %v1414_v13, %v434_v48 }
  0xf6   : > { %v459_v52 = vmax.f32 %v435_v49, 0.0 }
  0xfb   : > { %v436_v50 = vpop.f32.mrf.mxu0 }
  0xfc   : > { %v437_v51 = vadd.f32 %v1414_v13, %v436_v50 }
  0xfe   : > { %v460_v53 = vmax.f32 %v437_v51, 0.0 }
 0x100   : > { %v470_v54 = vpack.c.bf16 %v460_v53, %v459_v52 }
 0x102   : > { %608 = vmatmul.bf16.gmra.mxu1 %v470_v54  ;;  %657 = vmatmul.bf16.gmra.mxu2 %v470_v54 }
 0x103   : > { %v439_v55 = vpop.f32.mrf.mxu0 }
 0x104   : > { %v440_v56 = vadd.f32 %v1414_v13, %v439_v55 }
 0x106   : > { %v461_v59 = vmax.f32 %v440_v56, 0.0 }
 0x10b   : > { %v441_v57 = vpop.f32.mrf.mxu0 }
 0x10c   : > { %v442_v58 = vadd.f32 %v1414_v13, %v441_v57 }
 0x10e   : > { %v462_v60 = vmax.f32 %v442_v58, 0.0 }
 0x110   : > { %v471_v61 = vpack.c.bf16 %v462_v60, %v461_v59 }
 0x112   : > { %613 = vmatmul.bf16.vlgmr.msra.gmra.mxu3 %v471_v61 }
 0x113   : > { %v444_v62 = vpop.f32.mrf.mxu0 }
 0x114   : > { %v445_v63 = vadd.f32 %v1414_v13, %v444_v62 }
 0x116   : > { %v463_v2 = vmax.f32 %v445_v63, 0.0 }
 0x11b   : > { %v446_v0 = vpop.f32.mrf.mxu0 }
 0x11c   : > { %v447_v1 = vadd.f32 %v1414_v13, %v446_v0 }
 0x11e   : > { %v464_v3 = vmax.f32 %v447_v1, 0.0 }
 0x120   : > { %v472_v4 = vpack.c.bf16 %v464_v3, %v463_v2 }
 0x122   : > { %618 = vmatmul.bf16.gmra.mxu3 %v472_v4 }
 0x12f   : > { %v584_v7 = vpop.f32.mrf.mxu1 }
 0x130   : > { %v585_v9 = vadd.f32 %v584_v7, %v1436_v6 }
 0x132   : > { %v675_v10 = vmul.f32 %v1440_v8, %v585_v9  ;;  %662 = vmatmul.bf16.vlgmr.msrb.gmra.mxu3 %v471_v61 }
 0x134   : > { %707 = vst [vmem:[%s1446_s7] sm:$0xff] %v675_v10 }
 0x135   : > { %v633_v12 = vpop.f32.mrf.mxu2 }
 0x136   : > { %v634_v13 = vadd.f32 %v633_v12, %v1444_v11 }
 0x137   : > { %v586_v14 = vpop.f32.mrf.mxu1 }
 0x138   : > { %v676_v15 = vmul.f32 %v1440_v8, %v634_v13  ;;  %v587_v16 = vadd.f32 %v586_v14, %v1436_v6 }
 0x13a   : > { %708 = vst [vmem:[%s1446_s7 + $0x8] sm:$0xff] %v676_v15  ;;  %v677_v17 = vmul.f32 %v1440_v8, %v587_v16 }
 0x13c   : > { %709 = vst [vmem:[%s1446_s7 + $0x10] sm:$0xff] %v677_v17 }
 0x13d   : > { %v635_v18 = vpop.f32.mrf.mxu2 }
 0x13e   : > { %v636_v19 = vadd.f32 %v635_v18, %v1444_v11 }
 0x13f   : > { %v589_v20 = vpop.f32.mrf.mxu1 }
 0x140   : > { %v678_v21 = vmul.f32 %v1440_v8, %v636_v19  ;;  %v590_v22 = vadd.f32 %v589_v20, %v1436_v6 }
 0x142   : > { %710 = vst [vmem:[%s1446_s7 + $0x18] sm:$0xff] %v678_v21  ;;  %v679_v23 = vmul.f32 %v1440_v8, %v590_v22  ;;  %667 = vmatmul.bf16.gmra.mxu3 %v472_v4 }
 0x144   : > { %711 = vst [vmem:[%s1446_s7 + $0x20] sm:$0xff] %v679_v23 }
 0x145   : > { %v638_v24 = vpop.f32.mrf.mxu2 }
 0x146   : > { %v639_v25 = vadd.f32 %v638_v24, %v1444_v11 }
 0x147   : > { %v591_v26 = vpop.f32.mrf.mxu1 }
 0x148   : > { %v680_v27 = vmul.f32 %v1440_v8, %v639_v25  ;;  %v592_v28 = vadd.f32 %v591_v26, %v1436_v6 }
 0x14a   : > { %712 = vst [vmem:[%s1446_s7 + $0x28] sm:$0xff] %v680_v27  ;;  %v681_v29 = vmul.f32 %v1440_v8, %v592_v28 }
 0x14c   : > { %713 = vst [vmem:[%s1446_s7 + $0x30] sm:$0xff] %v681_v29 }
 0x14d   : > { %v640_v30 = vpop.f32.mrf.mxu2 }
 0x14e   : > { %v641_v31 = vadd.f32 %v640_v30, %v1444_v11 }
 0x14f   : > { %v594_v32 = vpop.f32.mrf.mxu1 }
 0x150   : > { %v682_v33 = vmul.f32 %v1440_v8, %v641_v31  ;;  %v595_v34 = vadd.f32 %v594_v32, %v1436_v6 }
 0x152   : > { %714 = vst [vmem:[%s1446_s7 + $0x38] sm:$0xff] %v682_v33  ;;  %v683_v35 = vmul.f32 %v1440_v8, %v595_v34 }
 0x154   : > { %715 = vst [vmem:[%s1446_s7 + $0x40] sm:$0xff] %v683_v35 }
 0x155   : > { %v643_v36 = vpop.f32.mrf.mxu2 }
 0x156   : > { %v644_v37 = vadd.f32 %v643_v36, %v1444_v11 }
 0x157   : > { %v596_v38 = vpop.f32.mrf.mxu1 }
 0x158   : > { %v684_v39 = vmul.f32 %v1440_v8, %v644_v37  ;;  %v597_v40 = vadd.f32 %v596_v38, %v1436_v6 }
 0x15a   : > { %716 = vst [vmem:[%s1446_s7 + $0x48] sm:$0xff] %v684_v39  ;;  %v685_v41 = vmul.f32 %v1440_v8, %v597_v40 }
 0x15c   : > { %717 = vst [vmem:[%s1446_s7 + $0x50] sm:$0xff] %v685_v41 }
 0x15d   : > { %v645_v42 = vpop.f32.mrf.mxu2 }
 0x15e   : > { %v646_v43 = vadd.f32 %v645_v42, %v1444_v11 }
 0x15f   : > { %v599_v44 = vpop.f32.mrf.mxu1 }
 0x160   : > { %v686_v45 = vmul.f32 %v1440_v8, %v646_v43  ;;  %v600_v46 = vadd.f32 %v599_v44, %v1436_v6 }
 0x162   : > { %718 = vst [vmem:[%s1446_s7 + $0x58] sm:$0xff] %v686_v45  ;;  %v687_v47 = vmul.f32 %v1440_v8, %v600_v46 }
 0x164   : > { %719 = vst [vmem:[%s1446_s7 + $0x60] sm:$0xff] %v687_v47 }
 0x165   : > { %v648_v48 = vpop.f32.mrf.mxu2 }
 0x166   : > { %v649_v49 = vadd.f32 %v648_v48, %v1444_v11 }
 0x167   : > { %v601_v50 = vpop.f32.mrf.mxu1 }
 0x168   : > { %v688_v51 = vmul.f32 %v1440_v8, %v649_v49  ;;  %v602_v52 = vadd.f32 %v601_v50, %v1436_v6 }
 0x16a   : > { %720 = vst [vmem:[%s1446_s7 + $0x68] sm:$0xff] %v688_v51  ;;  %v689_v53 = vmul.f32 %v1440_v8, %v602_v52 }
 0x16c   : > { %721 = vst [vmem:[%s1446_s7 + $0x70] sm:$0xff] %v689_v53 }
 0x16d   : > { %v650_v54 = vpop.f32.mrf.mxu2 }
 0x16e   : > { %v651_v55 = vadd.f32 %v650_v54, %v1444_v11 }
 0x16f   : > { %v604_v56 = vpop.f32.mrf.mxu1 }
 0x170   : > { %v690_v57 = vmul.f32 %v1440_v8, %v651_v55  ;;  %v605_v58 = vadd.f32 %v604_v56, %v1436_v6 }
 0x172   : > { %722 = vst [vmem:[%s1446_s7 + $0x78] sm:$0xff] %v690_v57  ;;  %v691_v59 = vmul.f32 %v1440_v8, %v605_v58 }
 0x174   : > { %723 = vst [vmem:[%s1446_s7 + $0x80] sm:$0xff] %v691_v59 }
 0x175   : > { %v653_v60 = vpop.f32.mrf.mxu2 }
 0x176   : > { %v654_v61 = vadd.f32 %v653_v60, %v1444_v11 }
 0x177   : > { %v606_v62 = vpop.f32.mrf.mxu1 }
 0x178   : > { %v692_v63 = vmul.f32 %v1440_v8, %v654_v61  ;;  %v607_v0 = vadd.f32 %v606_v62, %v1436_v6 }
 0x17a   : > { %724 = vst [vmem:[%s1446_s7 + $0x88] sm:$0xff] %v692_v63  ;;  %v693_v1 = vmul.f32 %v1440_v8, %v607_v0 }
 0x17c   : > { %725 = vst [vmem:[%s1446_s7 + $0x90] sm:$0xff] %v693_v1 }
 0x17d   : > { %v655_v2 = vpop.f32.mrf.mxu2 }
 0x17e   : > { %v656_v3 = vadd.f32 %v655_v2, %v1444_v11 }
 0x17f   : > { %v609_v4 = vpop.f32.mrf.mxu1 }
 0x180   : > { %v694_v5 = vmul.f32 %v1440_v8, %v656_v3  ;;  %v610_v7 = vadd.f32 %v609_v4, %v1436_v6 }
 0x182   : > { %726 = vst [vmem:[%s1446_s7 + $0x98] sm:$0xff] %v694_v5  ;;  %v695_v9 = vmul.f32 %v1440_v8, %v610_v7 }
 0x184   : > { %727 = vst [vmem:[%s1446_s7 + $0xa0] sm:$0xff] %v695_v9 }
 0x185   : > { %v658_v10 = vpop.f32.mrf.mxu2 }
 0x186   : > { %v659_v12 = vadd.f32 %v658_v10, %v1444_v11 }
 0x187   : > { %v611_v13 = vpop.f32.mrf.mxu1 }
 0x188   : > { %v696_v14 = vmul.f32 %v1440_v8, %v659_v12  ;;  %v612_v15 = vadd.f32 %v611_v13, %v1436_v6 }
 0x18a   : > { %728 = vst [vmem:[%s1446_s7 + $0xa8] sm:$0xff] %v696_v14  ;;  %v697_v16 = vmul.f32 %v1440_v8, %v612_v15 }
 0x18c   : > { %729 = vst [vmem:[%s1446_s7 + $0xb0] sm:$0xff] %v697_v16 }
 0x18d   : > { %v660_v17 = vpop.f32.mrf.mxu2 }
 0x18e   : > { %v661_v18 = vadd.f32 %v660_v17, %v1444_v11 }
 0x190   : > { %v698_v19 = vmul.f32 %v1440_v8, %v661_v18 }
 0x192   : > { %730 = vst [vmem:[%s1446_s7 + $0xb8] sm:$0xff] %v698_v19 }
 0x195   : > { %v614_v20 = vpop.f32.mrf.mxu3 }
 0x196   : > { %v615_v21 = vadd.f32 %v614_v20, %v1436_v6 }
 0x198   : > { %v699_v22 = vmul.f32 %v1440_v8, %v615_v21 }
 0x19a   : > { %731 = vst [vmem:[%s1446_s7 + $0xc0] sm:$0xff] %v699_v22 }
 0x19d   : > { %v616_v23 = vpop.f32.mrf.mxu3 }
 0x19e   : > { %v617_v24 = vadd.f32 %v616_v23, %v1436_v6 }
 0x1a0   : > { %v701_v25 = vmul.f32 %v1440_v8, %v617_v24 }
 0x1a2   : > { %733 = vst [vmem:[%s1446_s7 + $0xd0] sm:$0xff] %v701_v25 }
 0x1a5   : > { %v619_v26 = vpop.f32.mrf.mxu3 }
 0x1a6   : > { %v620_v27 = vadd.f32 %v619_v26, %v1436_v6 }
 0x1a8   : > { %v703_v28 = vmul.f32 %v1440_v8, %v620_v27 }
 0x1aa   : > { %735 = vst [vmem:[%s1446_s7 + $0xe0] sm:$0xff] %v703_v28 }
 0x1ad   : > { %v621_v29 = vpop.f32.mrf.mxu3 }
 0x1ae   : > { %v622_v30 = vadd.f32 %v621_v29, %v1436_v6 }
 0x1b0   : > { %v705_v31 = vmul.f32 %v1440_v8, %v622_v30 }
 0x1b2   : > { %737 = vst [vmem:[%s1446_s7 + $0xf0] sm:$0xff] %v705_v31 }
 0x1b5   : > { %v663_v32 = vpop.f32.mrf.mxu3 }
 0x1b6   : > { %v664_v33 = vadd.f32 %v663_v32, %v1444_v11 }
 0x1b8   : > { %v700_v34 = vmul.f32 %v1440_v8, %v664_v33 }
 0x1ba   : > { %732 = vst [vmem:[%s1446_s7 + $0xc8] sm:$0xff] %v700_v34 }
 0x1bd   : > { %v665_v35 = vpop.f32.mrf.mxu3 }
 0x1be   : > { %v666_v36 = vadd.f32 %v665_v35, %v1444_v11 }
 0x1c0   : > { %v702_v37 = vmul.f32 %v1440_v8, %v666_v36 }
 0x1c2   : > { %734 = vst [vmem:[%s1446_s7 + $0xd8] sm:$0xff] %v702_v37 }
 0x1c5   : > { %v668_v6 = vpop.f32.mrf.mxu3 }
 0x1c6   : > { %v669_v38 = vadd.f32 %v668_v6, %v1444_v11 }
 0x1c8   : > { %v704_v39 = vmul.f32 %v1440_v8, %v669_v38 }
 0x1ca   : > { %736 = vst [vmem:[%s1446_s7 + $0xe8] sm:$0xff] %v704_v39 }
 0x1cd   : > { %v670_v40 = vpop.f32.mrf.mxu3 }
 0x1ce   : > { %v671_v41 = vadd.f32 %v670_v40, %v1444_v11 }
 0x1d0   : > { %v706_v42 = vmul.f32 %v1440_v8, %v671_v41 }
 0x1d2   : > { %738 = vst [vmem:[%s1446_s7 + $0xf8] sm:$0xff] %v706_v42 }
 0x1d3   : > { %1117 = shalt.err (!%p1114_p5)
}
 0x1d4   : > { %s1170_s0 = smov 256   ;;  %s1171_s7 = smov 16  }
 0x1d5   : > { %1032 = dma.vmem_to_hbm [thread:$0]  (%p1250_p4), %s756_s15, 4096, %s758_s16, %s740_s26, %s1170_s0, %s1170_s0, %s1171_s7  }
 0x1d6 PF: > { %p1038_p6 = scmp.ge.s32.totalorder %s1168_s28, 2  ;;  %s772_s9 = sand.u32 1, %s1148_s23  }
 0x1d7   : > { %s773_s12 = scalar_lea.sflag [#allocation5], %s772_s9 }
 0x1d8   : > { %p1035_p7 = pnand %p1038_p6, %p1257_p8 }
 0x1da   : > { %p1036_p9 = pneg %p1035_p7 }
 0x1dc   : > { %1143 = dma.done.wait (%p1036_p9), %s773_s12, 4096  }
 0x1dd   : > { %1145 = vsyncadd (%p1036_p9), %s773_s12, 4294963200  ;;  %s20_s28 = sadd.s32 1, %s1168_s28   ;;  %s1590_s23 = smov %s1152_s24 }
 0x1de   : > { %p17_p10 = scmp.ge.s32.totalorder %s20_s28, 4   ;;  %s1591_s24 = smov %s1156_s25 }
 0x1df   : > { %s1592_s25 = smov %s1263_s11  ;;  %s1593_s26 = smov %s1164_s27 }
 0x1e0   : > { %s1594_s27 = smov %s1596_s30  ;;  %19 = sbr.rel (!%p17_p10) target bundleno = 6 (0x6), region = 87 }
 0x1e5   :  { %779 = vsyncpa [#allocation5], 1 }
 0x1e6   :  { %781 = vsyncpa [#allocation5 + $0x1], 1 }

</bundles_post_ra>
